<compile_context>
chip_gen: v7x
topology: tpu7x:2x2x1
jax: 0.10.0
libtpu: 0.0.40
codegen_flags: <defaults>
</compile_context>

<pallas_src>
import functools

import jax
import jax.numpy as jnp
from jax.experimental import pallas as pl
from jax.experimental.pallas import tpu as pltpu


def _round_up(x, m):
    return -(-x // m) * m


# ----------------------------------------------------------------------------
# Kernel
# ----------------------------------------------------------------------------
def _block_kernel(x_ref, wiT_ref, w1T_ref, w2T_ref, bias_ref, o_ref, *,
                  num_layers, dim, inner_dim, dim_pad, inner_pad,
                  silu_in_bf16):
    """One (bb, tile_hw) pixel block through init 1x1-conv + residual MLPs.

    x_ref   : (bb, tile_hw, text_dim)  input dtype (NHWC pixels, channel last)
    wiT_ref : (dim, text_dim)          bf16
    w1T_ref : (L, inner_dim, dim)      bf16
    w2T_ref : (L, dim, inner_dim)      bf16
    bias_ref: (R, 1) f32, packed [bi | b1_0 b2_0 | b1_1 b2_1 | ...],
              every segment padded to a multiple of 8 rows.
    o_ref   : (bb, dim, tile_hw)       channel-major output
    """
    wiT = wiT_ref[...]                                    # (dim, text_dim) bf16
    cdtype = wiT.dtype
    bb = x_ref.shape[0]

    for b in range(bb):                                   # unrolled batch block
        x = x_ref[b].astype(cdtype)                       # (tile_hw, text_dim)

        # init_block: 1x1 conv == channel contraction. Contract text_dim on
        # both operands so pixels land on the lane axis of the result
        # (no wrapper transpose, no lane-sparse output).
        y = jax.lax.dot_general(
            wiT, x, (((1,), (1,)), ((), ())),
            preferred_element_type=jnp.float32)           # (dim, tile_hw) f32
        y = y + bias_ref[0:dim, :]

        # main_block: L x (ff1 -> SiLU -> ff2 -> residual), fully unrolled so
        # the small-K matmuls stay back-to-back for the scheduler.
        off = dim_pad
        for l in range(num_layers):
            b1 = bias_ref[off:off + inner_dim, :]                 # (inner,1)
            b2 = bias_ref[off + inner_pad:off + inner_pad + dim, :]
            off += inner_pad + dim_pad

            h = jnp.dot(w1T_ref[l], y.astype(cdtype),
                        preferred_element_type=jnp.float32) + b1  # (inner,thw)
            if silu_in_bf16:
                # bf16 SiLU: halves EUP/VPU + cast work on v6e/v7x; the result
                # feeds a bf16 matmul anyway.
                hb = h.astype(jnp.bfloat16)
                hb = hb * jax.nn.sigmoid(hb)
            else:
                hb = (h * jax.nn.sigmoid(h)).astype(cdtype)
            y = jnp.dot(w2T_ref[l], hb,
                        preferred_element_type=jnp.float32) + b2 + y

        o_ref[b] = y.astype(o_ref.dtype)


# ----------------------------------------------------------------------------
# Blocking heuristic
# ----------------------------------------------------------------------------
def _choose_blocking(B, HW_pad, text_dim, dim, inner_dim, x_bytes, out_bytes,
                     max_tile_hw, vmem_budget=24 * 1024 * 1024):
    """Pick (batch_block, tile_hw): big tiles to amortize per-step overhead,
    capped by a conservative VMEM estimate, while keeping >= 2 parallel grid
    steps when possible (v7x has 2 TensorCores)."""
    lane = _round_up(max(text_dim, 1), 128)       # x tile pads lanes to 128
    bytes_per_px = (2 * x_bytes * lane            # x, double-buffered
                    + 2 * out_bytes * dim         # out, double-buffered
                    + 4 * dim                     # y (f32)
                    + (4 + 2) * inner_dim)        # h f32 + bf16 copy
    px_cap = max(128, min(max_tile_hw,
                          (vmem_budget // bytes_per_px) // 128 * 128))

    tile_hw = max(128, min(HW_pad, px_cap) // 128 * 128)
    while HW_pad % tile_hw:
        tile_hw -= 128

    bb = 1
    for cand in range(2, B + 1):
        if (B % cand == 0 and cand * tile_hw <= px_cap
                and (B // cand) * (HW_pad // tile_hw) >= 2):
            bb = cand
    return bb, tile_hw


# ----------------------------------------------------------------------------
# One-time parameter preparation (hoisted out of the per-call path)
# ----------------------------------------------------------------------------
def prepare_params(params, compute_dtype=jnp.bfloat16):
    """Transpose/cast weights and pack biases ONCE at init."""
    wi, bi, w1, b1, w2, b2 = (params["wi"], params["bi"], params["w1"],
                              params["b1"], params["w2"], params["b2"])
    dim = wi.shape[1]
    num_layers, _, inner_dim = w1.shape
    dim_pad, inner_pad = _round_up(dim, 8), _round_up(inner_dim, 8)

    def seg(v, n, n_pad):
        v = v.reshape(n).astype(jnp.float32)
        return jnp.pad(v, (0, n_pad - n))

    parts = [seg(bi, dim, dim_pad)]
    for l in range(num_layers):
        parts.append(seg(b1[l], inner_dim, inner_pad))
        parts.append(seg(b2[l], dim, dim_pad))
    bias = jnp.concatenate(parts)[:, None]        # (R, 1) f32, 8-row aligned

    return {
        "wiT": wi.T.astype(compute_dtype),                     # (dim, text_dim)
        "w1T": jnp.swapaxes(w1, 1, 2).astype(compute_dtype),   # (L, inner, dim)
        "w2T": jnp.swapaxes(w2, 1, 2).astype(compute_dtype),   # (L, dim, inner)
        "bias": bias,
    }


# ----------------------------------------------------------------------------
# Forward wrapper
# ----------------------------------------------------------------------------
@functools.partial(jax.jit,
                   static_argnames=("max_tile_hw", "silu_in_bf16", "out_dtype"))
def extra_control_block_pallas(text_hint, prepared, *, max_tile_hw=8192,
                               silu_in_bf16=True, out_dtype=None):
    """text_hint: (B, H, W, text_dim) NHWC. Returns (B, dim, H, W) NCHW.

    Set silu_in_bf16=False on v5e (no bf16 VPU/EUP); set out_dtype=jnp.bfloat16
    if downstream accepts it to cut output writeback bandwidth.
    """
    B, H, W, text_dim = text_hint.shape
    wiT, w1T, w2T, bias = (prepared["wiT"], prepared["w1T"],
                           prepared["w2T"], prepared["bias"])
    dim = wiT.shape[0]
    num_layers, inner_dim, _ = w1T.shape
    assert wiT.shape[1] == text_dim
    dim_pad, inner_pad = _round_up(dim, 8), _round_up(inner_dim, 8)
    bias_rows = bias.shape[0]

    out_dtype = text_hint.dtype if out_dtype is None else out_dtype

    HW = H * W
    HW_pad = _round_up(HW, 128)
    x = text_hint.reshape(B, HW, text_dim)        # free reshape, NO transpose
    if HW_pad != HW:
        x = jnp.pad(x, ((0, 0), (0, HW_pad - HW), (0, 0)))

    bb, tile_hw = _choose_blocking(
        B, HW_pad, text_dim, dim, inner_dim,
        x_bytes=jnp.dtype(x.dtype).itemsize,
        out_bytes=jnp.dtype(out_dtype).itemsize,
        max_tile_hw=max_tile_hw)

    kernel = functools.partial(
        _block_kernel, num_layers=num_layers, dim=dim, inner_dim=inner_dim,
        dim_pad=dim_pad, inner_pad=inner_pad, silu_in_bf16=silu_in_bf16)

    out = pl.pallas_call(
        kernel,
        out_shape=jax.ShapeDtypeStruct((B, dim, HW_pad), out_dtype),
        grid_spec=pltpu.PrefetchScalarGridSpec(
            num_scalar_prefetch=0,
            grid=(B // bb, HW_pad // tile_hw),
            in_specs=[
                pl.BlockSpec((bb, tile_hw, text_dim), lambda i, j: (i, j, 0)),
                pl.BlockSpec((dim, text_dim), lambda i, j: (0, 0)),
                pl.BlockSpec((num_layers, inner_dim, dim),
                             lambda i, j: (0, 0, 0)),
                pl.BlockSpec((num_layers, dim, inner_dim),
                             lambda i, j: (0, 0, 0)),
                pl.BlockSpec((bias_rows, 1), lambda i, j: (0, 0)),
            ],
            out_specs=pl.BlockSpec((bb, dim, tile_hw), lambda i, j: (i, 0, j)),
        ),
        compiler_params=pltpu.CompilerParams(
            dimension_semantics=("parallel", "parallel"),
            vmem_limit_bytes=32 * 1024 * 1024),
    )(x, wiT, w1T, w2T, bias)

    if HW_pad != HW:
        out = out[:, :, :HW]
    # (B, dim, H*W) -> (B, dim, H, W): pure reshape, no transpose pass.
    return out.reshape(B, dim, H, W)


# ----------------------------------------------------------------------------
# Pure-JAX reference mirroring the kernel's numerics
# ----------------------------------------------------------------------------
def extra_control_block_ref(text_hint, params, compute_dtype=jnp.bfloat16,
                            silu_in_bf16=True):
    wi = params["wi"].astype(compute_dtype)
    w1 = params["w1"].astype(compute_dtype)
    w2 = params["w2"].astype(compute_dtype)
    bi, b1, b2 = params["bi"], params["b1"], params["b2"]

    x = text_hint.astype(compute_dtype)
    y = jnp.einsum("bhwc,cd->bhwd", x, wi,
                   preferred_element_type=jnp.float32) + bi[0]
    for l in range(w1.shape[0]):
        h = jnp.einsum("bhwd,de->bhwe", y.astype(compute_dtype), w1[l],
                       preferred_element_type=jnp.float32) + b1[l, 0]
        if silu_in_bf16:
            h = h.astype(jnp.bfloat16)
            h = h * jax.nn.sigmoid(h)
        else:
            h = (h * jax.nn.sigmoid(h)).astype(compute_dtype)
        y = jnp.einsum("bhwe,ed->bhwd", h, w2[l],
                       preferred_element_type=jnp.float32) + b2[l, 0] + y
    return jnp.transpose(y, (0, 3, 1, 2)).astype(text_hint.dtype)


def init_params(key, *, dim, text_dim, inner_dim, num_layers):
    """Deterministic synthetic parameters (1x1 convs stored as (in, out) matrices)."""
    ks = jax.random.split(key, 6)
    scale = 0.05
    return {
        "wi": scale * jax.random.normal(ks[0], (text_dim, dim), jnp.float32),
        "bi": scale * jax.random.normal(ks[1], (1, dim), jnp.float32),
        "w1": scale * jax.random.normal(ks[2], (num_layers, dim, inner_dim), jnp.float32),
        "b1": scale * jax.random.normal(ks[3], (num_layers, 1, inner_dim), jnp.float32),
        "w2": scale * jax.random.normal(ks[4], (num_layers, inner_dim, dim), jnp.float32),
        "b2": scale * jax.random.normal(ks[5], (num_layers, 1, dim), jnp.float32),
    }


if __name__ == "__main__":
    # Small shapes consistent with the module: dim=16, inner_dim=dim*4,
    # text_dim=32, num_layers=3, batch=2, spatial 16x16 (NHWC input).
    B, H, W = 2, 16, 16
    DIM, TEXT_DIM, NUM_LAYERS = 16, 32, 3
    INNER_DIM = DIM * 4

    key = jax.random.PRNGKey(0)
    k_x, k_p = jax.random.split(key)
    text_hint = jax.random.normal(k_x, (B, H, W, TEXT_DIM), jnp.float32)  # NHWC
    params = init_params(k_p, dim=DIM, text_dim=TEXT_DIM,
                         inner_dim=INNER_DIM, num_layers=NUM_LAYERS)

    # Weight prep happens ONCE, outside the per-call forward path.
    prepared = prepare_params(params)

    out = extra_control_block_pallas(text_hint, prepared)
    out = jax.block_until_ready(out)

    ref = jax.block_until_ready(extra_control_block_ref(text_hint, params))
    assert out.shape == (B, DIM, H, W), out.shape
    assert jnp.allclose(out, ref, atol=1e-3, rtol=1e-3), \
        float(jnp.max(jnp.abs(out - ref)))

    print("KERNEL_OK")
</pallas_src>

<mosaic_0001>
module attributes {stable_mosaic.version = 11 : i64} {
  func.func @_block_kernel(%arg0: i32, %arg1: i32, %arg2: memref<1x256x32xf32, #tpu.memory_space<vmem>>, %arg3: memref<16x32xbf16, #tpu.memory_space<vmem>>, %arg4: memref<3x64x16xbf16, #tpu.memory_space<vmem>>, %arg5: memref<3x16x64xbf16, #tpu.memory_space<vmem>>, %arg6: memref<256x1xf32, #tpu.memory_space<vmem>>, %arg7: memref<1x16x256xf32, #tpu.memory_space<vmem>>) attributes {dimension_semantics = [#tpu.dimension_semantics<parallel>, #tpu.dimension_semantics<parallel>], iteration_bounds = array<i64: 2, 1>, scalar_prefetch = 0 : i64, scratch_operands = 0 : i64, tpu.core_type = #tpu.core_type<tc>, window_params = [{transform_indices = @transform_0, window_bounds = array<i64: 1, 256, 32>}, {pipeline_mode = #tpu.pipeline_mode<synchronous>, transform_indices = @transform_1, window_bounds = array<i64: 16, 32>}, {pipeline_mode = #tpu.pipeline_mode<synchronous>, transform_indices = @transform_2, window_bounds = array<i64: 3, 64, 16>}, {pipeline_mode = #tpu.pipeline_mode<synchronous>, transform_indices = @transform_3, window_bounds = array<i64: 3, 16, 64>}, {pipeline_mode = #tpu.pipeline_mode<synchronous>, transform_indices = @transform_4, window_bounds = array<i64: 256, 1>}, {transform_indices = @transform_5, window_bounds = array<i64: 1, 16, 256>}]} {
    %c0 = arith.constant 0 : index
    %c0_0 = arith.constant 0 : index
    %0 = vector.load %arg3[%c0, %c0_0] : memref<16x32xbf16, #tpu.memory_space<vmem>>, vector<16x32xbf16>
    %c0_1 = arith.constant 0 : index
    %c0_2 = arith.constant 0 : index
    %c0_3 = arith.constant 0 : index
    %1 = vector.load %arg2[%c0_1, %c0_2, %c0_3] : memref<1x256x32xf32, #tpu.memory_space<vmem>>, vector<1x256x32xf32>
    %2 = vector.shape_cast %1 : vector<1x256x32xf32> to vector<256x32xf32>
    %3 = arith.truncf %2 : vector<256x32xf32> to vector<256x32xbf16>
    %cst = arith.constant dense<0.000000e+00> : vector<16x256xf32>
    %4 = tpu.matmul %0, %3, %cst {dimension_numbers = #tpu.dot_dimension_numbers<[1], [1], [0], [0], [0, 0, 1, 0], [], []>} : vector<16x32xbf16>, vector<256x32xbf16>, vector<16x256xf32> -> vector<16x256xf32>
    %c0_4 = arith.constant 0 : index
    %c0_5 = arith.constant 0 : index
    %5 = vector.load %arg6[%c0_4, %c0_5] : memref<256x1xf32, #tpu.memory_space<vmem>>, vector<16x1xf32>
    %6 = vector.broadcast %5 : vector<16x1xf32> to vector<16x256xf32>
    %7 = arith.addf %4, %6 : vector<16x256xf32>
    %c16 = arith.constant 16 : index
    %c0_6 = arith.constant 0 : index
    %8 = vector.load %arg6[%c16, %c0_6] : memref<256x1xf32, #tpu.memory_space<vmem>>, vector<64x1xf32>
    %c80 = arith.constant 80 : index
    %c0_7 = arith.constant 0 : index
    %9 = vector.load %arg6[%c80, %c0_7] : memref<256x1xf32, #tpu.memory_space<vmem>>, vector<16x1xf32>
    %c0_8 = arith.constant 0 : index
    %c0_9 = arith.constant 0 : index
    %c0_10 = arith.constant 0 : index
    %10 = vector.load %arg4[%c0_8, %c0_9, %c0_10] : memref<3x64x16xbf16, #tpu.memory_space<vmem>>, vector<1x64x16xbf16>
    %11 = vector.shape_cast %10 : vector<1x64x16xbf16> to vector<64x16xbf16>
    %12 = arith.truncf %7 : vector<16x256xf32> to vector<16x256xbf16>
    %cst_11 = arith.constant dense<0.000000e+00> : vector<64x256xf32>
    %13 = tpu.matmul %11, %12, %cst_11 {dimension_numbers = #tpu.dot_dimension_numbers<[1], [0], [0], [1], [0, 0, 1, 1], [], []>} : vector<64x16xbf16>, vector<16x256xbf16>, vector<64x256xf32> -> vector<64x256xf32>
    %14 = vector.broadcast %8 : vector<64x1xf32> to vector<64x256xf32>
    %15 = arith.addf %13, %14 : vector<64x256xf32>
    %16 = arith.truncf %15 : vector<64x256xf32> to vector<64x256xbf16>
    %17 = arith.negf %16 : vector<64x256xbf16>
    %18 = math.exp %17 : vector<64x256xbf16>
    %cst_12 = arith.constant 1.000000e+00 : bf16
    %19 = vector.broadcast %cst_12 : bf16 to vector<64x256xbf16>
    %20 = arith.addf %19, %18 : vector<64x256xbf16>
    %21 = arith.divf %19, %20 : vector<64x256xbf16>
    %22 = arith.mulf %16, %21 : vector<64x256xbf16>
    %c0_13 = arith.constant 0 : index
    %c0_14 = arith.constant 0 : index
    %c0_15 = arith.constant 0 : index
    %23 = vector.load %arg5[%c0_13, %c0_14, %c0_15] : memref<3x16x64xbf16, #tpu.memory_space<vmem>>, vector<1x16x64xbf16>
    %24 = vector.shape_cast %23 : vector<1x16x64xbf16> to vector<16x64xbf16>
    %cst_16 = arith.constant dense<0.000000e+00> : vector<16x256xf32>
    %25 = tpu.matmul %24, %22, %cst_16 {dimension_numbers = #tpu.dot_dimension_numbers<[1], [0], [0], [1], [0, 0, 1, 1], [], []>} : vector<16x64xbf16>, vector<64x256xbf16>, vector<16x256xf32> -> vector<16x256xf32>
    %26 = vector.broadcast %9 : vector<16x1xf32> to vector<16x256xf32>
    %27 = arith.addf %25, %26 : vector<16x256xf32>
    %28 = arith.addf %27, %7 : vector<16x256xf32>
    %c96 = arith.constant 96 : index
    %c0_17 = arith.constant 0 : index
    %29 = vector.load %arg6[%c96, %c0_17] : memref<256x1xf32, #tpu.memory_space<vmem>>, vector<64x1xf32>
    %c160 = arith.constant 160 : index
    %c0_18 = arith.constant 0 : index
    %30 = vector.load %arg6[%c160, %c0_18] : memref<256x1xf32, #tpu.memory_space<vmem>>, vector<16x1xf32>
    %c1 = arith.constant 1 : index
    %c0_19 = arith.constant 0 : index
    %c0_20 = arith.constant 0 : index
    %31 = vector.load %arg4[%c1, %c0_19, %c0_20] : memref<3x64x16xbf16, #tpu.memory_space<vmem>>, vector<1x64x16xbf16>
    %32 = vector.shape_cast %31 : vector<1x64x16xbf16> to vector<64x16xbf16>
    %33 = arith.truncf %28 : vector<16x256xf32> to vector<16x256xbf16>
    %cst_21 = arith.constant dense<0.000000e+00> : vector<64x256xf32>
    %34 = tpu.matmul %32, %33, %cst_21 {dimension_numbers = #tpu.dot_dimension_numbers<[1], [0], [0], [1], [0, 0, 1, 1], [], []>} : vector<64x16xbf16>, vector<16x256xbf16>, vector<64x256xf32> -> vector<64x256xf32>
    %35 = vector.broadcast %29 : vector<64x1xf32> to vector<64x256xf32>
    %36 = arith.addf %34, %35 : vector<64x256xf32>
    %37 = arith.truncf %36 : vector<64x256xf32> to vector<64x256xbf16>
    %38 = arith.negf %37 : vector<64x256xbf16>
    %39 = math.exp %38 : vector<64x256xbf16>
    %cst_22 = arith.constant 1.000000e+00 : bf16
    %40 = vector.broadcast %cst_22 : bf16 to vector<64x256xbf16>
    %41 = arith.addf %40, %39 : vector<64x256xbf16>
    %42 = arith.divf %40, %41 : vector<64x256xbf16>
    %43 = arith.mulf %37, %42 : vector<64x256xbf16>
    %c1_23 = arith.constant 1 : index
    %c0_24 = arith.constant 0 : index
    %c0_25 = arith.constant 0 : index
    %44 = vector.load %arg5[%c1_23, %c0_24, %c0_25] : memref<3x16x64xbf16, #tpu.memory_space<vmem>>, vector<1x16x64xbf16>
    %45 = vector.shape_cast %44 : vector<1x16x64xbf16> to vector<16x64xbf16>
    %cst_26 = arith.constant dense<0.000000e+00> : vector<16x256xf32>
    %46 = tpu.matmul %45, %43, %cst_26 {dimension_numbers = #tpu.dot_dimension_numbers<[1], [0], [0], [1], [0, 0, 1, 1], [], []>} : vector<16x64xbf16>, vector<64x256xbf16>, vector<16x256xf32> -> vector<16x256xf32>
    %47 = vector.broadcast %30 : vector<16x1xf32> to vector<16x256xf32>
    %48 = arith.addf %46, %47 : vector<16x256xf32>
    %49 = arith.addf %48, %28 : vector<16x256xf32>
    %c176 = arith.constant 176 : index
    %c0_27 = arith.constant 0 : index
    %50 = vector.load %arg6[%c176, %c0_27] : memref<256x1xf32, #tpu.memory_space<vmem>>, vector<64x1xf32>
    %c240 = arith.constant 240 : index
    %c0_28 = arith.constant 0 : index
    %51 = vector.load %arg6[%c240, %c0_28] : memref<256x1xf32, #tpu.memory_space<vmem>>, vector<16x1xf32>
    %c2 = arith.constant 2 : index
    %c0_29 = arith.constant 0 : index
    %c0_30 = arith.constant 0 : index
    %52 = vector.load %arg4[%c2, %c0_29, %c0_30] : memref<3x64x16xbf16, #tpu.memory_space<vmem>>, vector<1x64x16xbf16>
    %53 = vector.shape_cast %52 : vector<1x64x16xbf16> to vector<64x16xbf16>
    %54 = arith.truncf %49 : vector<16x256xf32> to vector<16x256xbf16>
    %cst_31 = arith.constant dense<0.000000e+00> : vector<64x256xf32>
    %55 = tpu.matmul %53, %54, %cst_31 {dimension_numbers = #tpu.dot_dimension_numbers<[1], [0], [0], [1], [0, 0, 1, 1], [], []>} : vector<64x16xbf16>, vector<16x256xbf16>, vector<64x256xf32> -> vector<64x256xf32>
    %56 = vector.broadcast %50 : vector<64x1xf32> to vector<64x256xf32>
    %57 = arith.addf %55, %56 : vector<64x256xf32>
    %58 = arith.truncf %57 : vector<64x256xf32> to vector<64x256xbf16>
    %59 = arith.negf %58 : vector<64x256xbf16>
    %60 = math.exp %59 : vector<64x256xbf16>
    %cst_32 = arith.constant 1.000000e+00 : bf16
    %61 = vector.broadcast %cst_32 : bf16 to vector<64x256xbf16>
    %62 = arith.addf %61, %60 : vector<64x256xbf16>
    %63 = arith.divf %61, %62 : vector<64x256xbf16>
    %64 = arith.mulf %58, %63 : vector<64x256xbf16>
    %c2_33 = arith.constant 2 : index
    %c0_34 = arith.constant 0 : index
    %c0_35 = arith.constant 0 : index
    %65 = vector.load %arg5[%c2_33, %c0_34, %c0_35] : memref<3x16x64xbf16, #tpu.memory_space<vmem>>, vector<1x16x64xbf16>
    %66 = vector.shape_cast %65 : vector<1x16x64xbf16> to vector<16x64xbf16>
    %cst_36 = arith.constant dense<0.000000e+00> : vector<16x256xf32>
    %67 = tpu.matmul %66, %64, %cst_36 {dimension_numbers = #tpu.dot_dimension_numbers<[1], [0], [0], [1], [0, 0, 1, 1], [], []>} : vector<16x64xbf16>, vector<64x256xbf16>, vector<16x256xf32> -> vector<16x256xf32>
    %68 = vector.broadcast %51 : vector<16x1xf32> to vector<16x256xf32>
    %69 = arith.addf %67, %68 : vector<16x256xf32>
    %70 = arith.addf %69, %49 : vector<16x256xf32>
    %c0_37 = arith.constant 0 : index
    %c0_38 = arith.constant 0 : index
    %c0_39 = arith.constant 0 : index
    %71 = vector.load %arg7[%c0_37, %c0_38, %c0_39] : memref<1x16x256xf32, #tpu.memory_space<vmem>>, vector<1x16x256xf32>
    %72 = vector.shape_cast %71 : vector<1x16x256xf32> to vector<16x256xf32>
    %73 = vector.shape_cast %70 : vector<16x256xf32> to vector<1x16x256xf32>
    tpu.vector_store %arg7[%c0_37, %c0_38, %c0_39], %73 {strides = array<i32>} : memref<1x16x256xf32, #tpu.memory_space<vmem>>, vector<1x16x256xf32>,
    return
  }
  func.func @transform_0(%arg0: i32, %arg1: i32) -> (i32, i32, i32) {
    %c0_i32 = arith.constant 0 : i32
    %c0_i32_0 = arith.constant 0 : i32
    return %arg0, %arg1, %c0_i32 : i32, i32, i32
  }
  func.func @transform_1(%arg0: i32, %arg1: i32) -> (i32, i32) {
    %c0_i32 = arith.constant 0 : i32
    %c0_i32_0 = arith.constant 0 : i32
    %c0_i32_1 = arith.constant 0 : i32
    return %c0_i32, %c0_i32_0 : i32, i32
  }
  func.func @transform_2(%arg0: i32, %arg1: i32) -> (i32, i32, i32) {
    %c0_i32 = arith.constant 0 : i32
    %c0_i32_0 = arith.constant 0 : i32
    %c0_i32_1 = arith.constant 0 : i32
    %c0_i32_2 = arith.constant 0 : i32
    return %c0_i32, %c0_i32_0, %c0_i32_1 : i32, i32, i32
  }
  func.func @transform_3(%arg0: i32, %arg1: i32) -> (i32, i32, i32) {
    %c0_i32 = arith.constant 0 : i32
    %c0_i32_0 = arith.constant 0 : i32
    %c0_i32_1 = arith.constant 0 : i32
    %c0_i32_2 = arith.constant 0 : i32
    return %c0_i32, %c0_i32_0, %c0_i32_1 : i32, i32, i32
  }
  func.func @transform_4(%arg0: i32, %arg1: i32) -> (i32, i32) {
    %c0_i32 = arith.constant 0 : i32
    %c0_i32_0 = arith.constant 0 : i32
    %c0_i32_1 = arith.constant 0 : i32
    return %c0_i32, %c0_i32_0 : i32, i32
  }
  func.func @transform_5(%arg0: i32, %arg1: i32) -> (i32, i32, i32) {
    %c0_i32 = arith.constant 0 : i32
    %c0_i32_0 = arith.constant 0 : i32
    return %arg0, %c0_i32, %arg1 : i32, i32, i32
  }
}

</mosaic_0001>

<bundles_post_ra>
// kernel: extra_control_block_pallas.1
= control target key start
LH: loop header
LB: loop body
LE: loop exit
PB: predicated region body
PF: predicated region fallthrough
CT: control target
= control target key end

     0   :  { %10 = vsyncpa [#allocation3], 0  ;;  %s2323_s0 = inlined_call_operand.hbm [shape: f32[2,256,32], index: 0, kind: input, shape index: {}]   ;;  %s2324_s1 = inlined_call_operand.vmem [shape: bf16[16,32], index: 1, kind: input, shape index: {}]   ;;  %s2325_s2 = inlined_call_operand.vmem [shape: bf16[3,64,16], index: 2, kind: input, shape index: {}]   ;;  %s2326_s3 = inlined_call_operand.vmem [shape: bf16[3,16,64], index: 3, kind: input, shape index: {}]   ;;  %s2327_s4 = inlined_call_operand.vmem [shape: f32[256,1], index: 4, kind: input, shape index: {}]   ;;  %s2328_s5 = inlined_call_operand.vmem [shape: f32[2,16,256], index: 5, kind: output, shape index: {}]  }
   0x1   :  { %12 = vsyncpa [#allocation3 + $0x1], 0  ;;  %s1859_s18 = smov 0   ;;  %s1861_s19 = smov 0  }
   0x2   :  { %s1863_s20 = smov 0   ;;  %s1865_s21 = smov 0  }
   0x3   :  { %s1867_s22 = smov 0   ;;  %s1869_s23 = smov 0  }
   0x4 LB: > { %s1454_s24 = sadd.s32 4294967295, %s1823_s23   ;;  %s30_s25 = sadd.s32 1, %s1819_s22  ;;  %s1823_s23 = sphi %s1869_s23, %s18_s23   ;;  %s1819_s22 = sphi %s1867_s22, %s2336_s22   ;;  %s1815_s21 = sphi %s1865_s21, %s2335_s21   ;;  %s1811_s20 = sphi %s1863_s20, %s2334_s20   ;;  %s1807_s19 = sphi %s1861_s19, %s2333_s19   ;;  %s1803_s18 = sphi %s1859_s18, %s2332_s18  }
   0x5   : > { %p32_p0 = scmp.ge.s32.totalorder %s30_s25, 2  ;;  %s39_s26 = sadd.s32 1, %s1811_s20 }
   0x6   : > { %p46_p1 = scmp.ne.s32.totalorder %s1811_s20, %s1807_s19  ;;  %p47_p2 = scmp.eq.s32.totalorder %s1823_s23, 0 }
   0x7   : > { %s2338_s25 = smov (%p32_p0, %s30_s25), 0  ;;  %p52_p4 = scmp.ne.s32.totalorder %s1807_s19, %s1803_s18 }
   0x8   : > { %p1895_p3 = por %p47_p2, %p46_p1  ;;  %s34_s28 = ssub.s32 %s1819_s22, %s2338_s25 }
   0x9   : > { %p53_p5 = scmp.eq.s32.totalorder %s1454_s24, 0  ;;  %p37_p6 = scmp.eq.s32.totalorder %s34_s28, 0 }
   0xa   : > { %p1577_p8 = scmp.lt.s32.totalorder %s1823_s23, 2  ;;  %s200_s6 = sand.u32 1, %s1811_s20  }
   0xb   : > { %p1902_p7 = por %p53_p5, %p52_p4  ;;  %s1543_s7 = sshll.u32 %s1819_s22, 12 }
   0xc   : > { %s1908_s30 = scalar_select %p37_p6, %s1811_s20, %s39_s26  }
   0xd   : > { %s1458_s8 = sshll.u32 %s200_s6, 8  ;;  %s1915_s11 = scalar_lea.hbm %s2323_s0, %s1543_s7 }
   0xe   : > { %s204_s12 = scalar_lea.vmem [#allocation2], %s1458_s8  ;;  %p1919_p9 = pnand %p1577_p8, %p1895_p3 }
   0xf   : > { %s213_s13 = sshll.u32 %s204_s12, 4  ;;  %s1925_s15 = scalar_lea.sflag [#allocation3], %s200_s6  ;;  %s1923_s13 = int_to_ptr.vmem [resolvable:$true] %s213_s13 }
  0x10   : > { %s1743_s16 = scalar_lea.hbm %s1915_s11, 4096  ;;  %p1745_p11 = pneg %p1919_p9 }
  0x11   : > { %p1744_p10 = scmp.ne.s32.totalorder %s1915_s11, %s1743_s16  ;;  %s1748_s24 = scalar_lea.hbm %s2323_s0, 8192 }
  0x12   : > { %p1749_p0 = scmp.lt.u32.totalorder %s1915_s11, %s2323_s0  ;;  %p1750_p1 = scmp.lt.u32.totalorder %s1748_s24, %s1743_s16 }
  0x13   : > { %p1746_p12 = pnand %p1745_p11, %p1744_p10  ;;  %p1752_p3 = scmp.lt.u32.totalorder %s1743_s16, %s1915_s11 }
  0x14   : > { %p1751_p2 = por %p1750_p1, %p1749_p0 }
  0x15   : > { %p1747_p13 = pneg %p1746_p12 }
  0x16   : > { %p1753_p4 = por %p1752_p3, %p1751_p2 }
  0x18   : > { %p1754_p5 = pnand %p1753_p4, %p1747_p13 }
  0x1a   : > { %1757 = shalt.err (!%p1754_p5)
}
  0x1b   : > { %s1758_s28 = scalar_lea.vmem %s1923_s13, 4096  ;;  %s1825_s6 = smov [#allocation2]  }
  0x1c   : > { %p1759_p6 = scmp.ne.s32.totalorder %s1923_s13, %s1758_s28  ;;  %s1763_s7 = sshll.u32 %s1825_s6, 4  ;;  %s1764_s7 = int_to_ptr.vmem [resolvable:$false] %s1763_s7 }
  0x1d   : > { %s1765_s8 = scalar_lea.vmem %s1764_s7, 8192  ;;  %p1766_p12 = scmp.lt.s32.totalorder %s1923_s13, %s1764_s7 }
  0x1e   : > { %p1761_p8 = pnand %p1759_p6, %p1745_p11  ;;  %p1767_p0 = scmp.lt.s32.totalorder %s1765_s8, %s1758_s28 }
  0x20   : > { %p1762_p10 = pneg %p1761_p8  ;;  %p1768_p1 = por %p1767_p0, %p1766_p12 }
  0x22   : > { %p1769_p2 = pnand %p1768_p1, %p1762_p10 }
  0x24   : > { %1772 = shalt.err (!%p1769_p2)
}
  0x25   : > { %s1826_s9 = smov 128   ;;  %s1827_s10 = smov 8  }
  0x26   : > { %1576 = dma.hbm_to_vmem [thread:$0]  (!%p1919_p9), %s1915_s11, 4096, %s1923_s13, %s1925_s15, %s1826_s9, %s1826_s9, %s1827_s10  }
  0x27   : > { %p1461_p11 = scmp.ge.s32.totalorder %s1823_s23, 1  ;;  %p221_p13 = scmp.lt.s32.totalorder %s1823_s23, 3 }
  0x29   : > { %p222_p3 = pnand %p1461_p11, %p221_p13 }
  0x2a   : > { %s227_s12 = sand.u32 (!%p222_p3), 1, %s1807_s19  }
  0x2b   : > { %225 = sbr.rel (%p222_p3) target bundleno = 1849 (0x739), region = 40  ;;  %s1462_s16 = sshll.u32 (!%p222_p3), %s227_s12, 8 }
  0x2c   : > { %s228_s17 = scalar_lea.sflag (!%p222_p3), [#allocation3], %s227_s12  ;;  %s1956_s18 = scalar_lea.vmem (!%p222_p3), [#allocation2], %s1462_s16 }
  0x32   : > { %1798 = dma.done.wait (%p1902_p7), %s228_s17, 4096  }
  0x33   : > { %1800 = vsyncadd (%p1902_p7), %s228_s17, 4294963200  ;;  %v1828_v0 = vmov 0   ;;  %v293_v1 = vld [vmem:[%s1956_s18 + $0x80] sm:$0xff]  ;;  %v294_v2 = vld [vmem:[%s1956_s18 + $0x88] sm:$0xff]  ;;  %vm342_vm0 = vcmask 261120   ;;  %vm517_vm1 = vcmask 130048  }
  0x34   : > { %1629 = vset.pattern.permute.xlu0 %v1828_v0  ;;  %562 = vmatprep.mubr.bf16.mxu1 %v1828_v0  ;;  %v277_v3 = vld [vmem:[%s1956_s18] sm:$0xff]  ;;  %v317_v4 = vpack.c.bf16 %v294_v2, %v293_v1  ;;  %v278_v5 = vld [vmem:[%s1956_s18 + $0x8] sm:$0xff]  ;;  %v295_v6 = vld [vmem:[%s1956_s18 + $0x90] sm:$0xff]  ;;  %vm692_vm2 = vcmask 523264   ;;  %p264_p7 = scmp.lt.s32.totalorder %s1815_s21, 1 }
  0x35   : > { %1630 = vset.pattern.permute.xlu1 %v1828_v0  ;;  %v296_v7 = vld [vmem:[%s1956_s18 + $0x98] sm:$0xff]  ;;  %v309_v8 = vpack.c.bf16 %v278_v5, %v277_v3  ;;  %v279_v10 = vld [vmem:[%s1956_s18 + $0x10] sm:$0xff]  ;;  %v297_v14 = vld [vmem:[%s1956_s18 + $0xa0] sm:$0xff] }
  0x36   : > { %v318_v9 = vpack.c.bf16 %v296_v7, %v295_v6  ;;  %1563 = vmatprep.subr.msk.bf16.mxu0 %vm342_vm0, %v317_v4  ;;  %v280_v11 = vld [vmem:[%s1956_s18 + $0x18] sm:$0xff]  ;;  %v298_v15 = vld [vmem:[%s1956_s18 + $0xa8] sm:$0xff]  ;;  %v281_v16 = vld [vmem:[%s1956_s18 + $0x20] sm:$0xff]  ;;  %s2340_s21 = smov (!%p264_p7, %s1815_s21), 1 }
  0x37   : > { %v347_v12 = vsel %vm342_vm0, %v309_v8, 0  ;;  %v310_v13 = vpack.c.bf16 %v280_v11, %v279_v10  ;;  %v282_v17 = vld [vmem:[%s1956_s18 + $0x28] sm:$0xff]  ;;  %v283_v18 = vld [vmem:[%s1956_s18 + $0x30] sm:$0xff]  ;;  %v284_v19 = vld [vmem:[%s1956_s18 + $0x38] sm:$0xff]  ;;  %v319_v21 = vpack.c.bf16 %v298_v15, %v297_v14  ;;  %s1544_s27 = sshll.u32 %s2340_s21, 5 }
  0x38   : > { %1546 = vmatpush3.bf16.xpose.msra.mxu0 %v347_v12  ;;  %v1986_v22 = vld [vmem:[%s2324_s1] sm:$0xff]   ;;  %v311_v24 = vpack.c.bf16 %v282_v17, %v281_v16  ;;  %v312_v25 = vpack.c.bf16 %v284_v19, %v283_v18  ;;  %v326_v26 = vld [vmem:[%s2327_s4 + $0x8] sm:$0xff]  ;;  %v299_v27 = vld [vmem:[%s1956_s18 + $0xb0] sm:$0xff]  ;;  %s271_s7 = scalar_lea.vmem %s2328_s5, %s1544_s27 }
  0x39   : > { %1564 = vmatprep.subr.msk.bf16.mxu0 %vm342_vm0, %v318_v9  ;;  %v350_v20 = vsel %vm342_vm0, %v310_v13, 0  ;;  %v325_v23 = vld [vmem:[%s2327_s4] sm:$0xff]  ;;  %1561 = vmatprep.mubr.msk.bf16.mxu0 %vm342_vm0, %v1986_v22  ;;  %v300_v28 = vld [vmem:[%s1956_s18 + $0xb8] sm:$0xff]  ;;  %v441_v33 = vld [vmem:[%s2327_s4 + $0x30] sm:$0xff] }
  0x3a   : > { %329 = vperm.xlu0 %1629, %v325_v23   ;;  %v353_v29 = vsel %vm342_vm0, %v311_v24, 0  ;;  %v356_v30 = vsel %vm342_vm0, %v312_v25, 0  ;;  %v439_v31 = vld [vmem:[%s2327_s4 + $0x20] sm:$0xff]  ;;  %v320_v32 = vpack.c.bf16 %v300_v28, %v299_v27  ;;  %v302_v35 = vld [vmem:[%s1956_s18 + $0xc8] sm:$0xff]  ;;  %v445_v40 = vld [vmem:[%s2327_s4 + $0x50] sm:$0xff] }
  0x3b   : > { %v301_v34 = vld [vmem:[%s1956_s18 + $0xc0] sm:$0xff]  ;;  %v286_v39 = vld [vmem:[%s1956_s18 + $0x48] sm:$0xff]  ;;  %v303_v42 = vld [vmem:[%s1956_s18 + $0xd0] sm:$0xff] }
  0x3c   : > { %v443_v36 = vld [vmem:[%s2327_s4 + $0x40] sm:$0xff]  ;;  %v321_v37 = vpack.c.bf16 %v302_v35, %v301_v34  ;;  %v304_v43 = vld [vmem:[%s1956_s18 + $0xd8] sm:$0xff]  ;;  %v287_v47 = vld [vmem:[%s1956_s18 + $0x50] sm:$0xff] }
  0x3d   : > { %v285_v38 = vld [vmem:[%s1956_s18 + $0x40] sm:$0xff]  ;;  %v322_v46 = vpack.c.bf16 %v304_v43, %v303_v42  ;;  %v288_v48 = vld [vmem:[%s1956_s18 + $0x58] sm:$0xff]  ;;  %v745_v49 = vld [vmem:[%s2327_s4 + $0x70] sm:$0xff] }
  0x3e   : > { %334 = vperm.xlu0 %1629, %v326_v26   ;;  %v313_v41 = vpack.c.bf16 %v286_v39, %v285_v38  ;;  %v743_v44 = vld [vmem:[%s2327_s4 + $0x60] sm:$0xff]  ;;  %v314_v50 = vpack.c.bf16 %v288_v48, %v287_v47  ;;  %v306_v52 = vld [vmem:[%s1956_s18 + $0xe8] sm:$0xff]  ;;  %v749_v58 = vld [vmem:[%s2327_s4 + $0x90] sm:$0xff] }
  0x3f   : > { %v305_v51 = vld [vmem:[%s1956_s18 + $0xe0] sm:$0xff]  ;;  %v290_v57 = vld [vmem:[%s1956_s18 + $0x68] sm:$0xff]  ;;  %v307_v60 = vld [vmem:[%s1956_s18 + $0xf0] sm:$0xff] }
  0x40   : > { %1548 = vmatpush3.bf16.xpose.msra.mxu0 %v350_v20  ;;  %v359_v45 = vsel %vm342_vm0, %v313_v41, 0  ;;  %v747_v53 = vld [vmem:[%s2327_s4 + $0x80] sm:$0xff]  ;;  %v362_v54 = vsel %vm342_vm0, %v314_v50, 0  ;;  %v323_v55 = vpack.c.bf16 %v306_v52, %v305_v51  ;;  %v308_v61 = vld [vmem:[%s1956_s18 + $0xf8] sm:$0xff]  ;;  %v291_v2 = vld [vmem:[%s1956_s18 + $0x70] sm:$0xff] }
  0x41   : > { %1565 = vmatprep.subr.msk.bf16.mxu0 %vm342_vm0, %v319_v21  ;;  %v289_v56 = vld [vmem:[%s1956_s18 + $0x60] sm:$0xff]  ;;  %v324_v1 = vpack.c.bf16 %v308_v61, %v307_v60  ;;  %v292_v3 = vld [vmem:[%s1956_s18 + $0x78] sm:$0xff]  ;;  %v1049_v4 = vld [vmem:[%s2327_s4 + $0xb0] sm:$0xff] }
  0x42   : > { %469 = vperm.xlu0 %1629, %v439_v31   ;;  %v315_v59 = vpack.c.bf16 %v290_v57, %v289_v56  ;;  %v751_v62 = vld [vmem:[%s2327_s4 + $0xa0] sm:$0xff]  ;;  %v316_v5 = vpack.c.bf16 %v292_v3, %v291_v2  ;;  %v1053_v8 = vld [vmem:[%s2327_s4 + $0xd0] sm:$0xff]  ;;  %v438_v12 = vld [vmem:[%s2327_s4 + $0x18] sm:$0xff] }
  0x43   : > { %v1051_v6 = vld [vmem:[%s2327_s4 + $0xc0] sm:$0xff]  ;;  %v1057_v10 = vld [vmem:[%s2327_s4 + $0xf0] sm:$0xff]  ;;  %v440_v13 = vld [vmem:[%s2327_s4 + $0x28] sm:$0xff] }
  0x44   : > { %v365_v63 = vsel %vm342_vm0, %v315_v59, 0  ;;  %v368_v7 = vsel %vm342_vm0, %v316_v5, 0  ;;  %v1055_v9 = vld [vmem:[%s2327_s4 + $0xe0] sm:$0xff]  ;;  %v437_v11 = vld [vmem:[%s2327_s4 + $0x10] sm:$0xff]  ;;  %v442_v14 = vld [vmem:[%s2327_s4 + $0x38] sm:$0xff] }
  0x45   : > { %459 = vperm.xlu1 %1630, %v437_v11   ;;  %v444_v15 = vld [vmem:[%s2327_s4 + $0x48] sm:$0xff]  ;;  %v446_v16 = vld [vmem:[%s2327_s4 + $0x58] sm:$0xff]  ;;  %v1632_v39 = vld [vmem:[%s2325_s2] sm:$0xff]  }
  0x46   : > { %479 = vperm.xlu0 %1629, %v441_v33   ;;  %v744_v17 = vld [vmem:[%s2327_s4 + $0x68] sm:$0xff]  ;;  %v746_v18 = vld [vmem:[%s2327_s4 + $0x78] sm:$0xff]  ;;  %v1634_v41 = vld [vmem:[%s2325_s2 + $0x10] sm:$0xff]  }
  0x47   : > { %v748_v19 = vld [vmem:[%s2327_s4 + $0x88] sm:$0xff]  ;;  %v750_v20 = vld [vmem:[%s2327_s4 + $0x98] sm:$0xff] }
  0x48   : > { %1550 = vmatpush3.bf16.xpose.msra.mxu0 %v353_v29  ;;  %v752_v21 = vld [vmem:[%s2327_s4 + $0xa8] sm:$0xff]  ;;  %v1054_v24 = vld [vmem:[%s2327_s4 + $0xd8] sm:$0xff] }
  0x49   : > { %1566 = vmatprep.subr.msk.bf16.mxu0 %vm342_vm0, %v320_v32  ;;  %464 = vperm.xlu1 %1630, %v438_v12   ;;  %v1052_v23 = vld [vmem:[%s2327_s4 + $0xc8] sm:$0xff]  ;;  %v1058_v26 = vld [vmem:[%s2327_s4 + $0xf8] sm:$0xff] }
  0x4a   : > { %489 = vperm.xlu0 %1629, %v443_v36   ;;  %v1056_v25 = vld [vmem:[%s2327_s4 + $0xe8] sm:$0xff]  ;;  %v1635_v42 = vld [vmem:[%s2325_s2 + $0x18] sm:$0xff]  }
  0x4d   : > { %474 = vperm.xlu1 %1630, %v440_v13  }
  0x4e   : > { %679 = vperm.xlu0 %1629, %v445_v40   ;;  %v1633_v40 = vld [vmem:[%s2325_s2 + $0x8] sm:$0xff]  }
  0x50   : > { %1552 = vmatpush3.bf16.xpose.msra.mxu0 %v356_v30 }
  0x51   : > { %1567 = vmatprep.subr.msk.bf16.mxu0 %vm342_vm0, %v321_v37  ;;  %484 = vperm.xlu1 %1630, %v442_v14  }
  0x52   : > { %766 = vperm.xlu0 %1629, %v743_v44  }
  0x55   : > { %494 = vperm.xlu1 %1630, %v444_v15  }
  0x56   : > { %776 = vperm.xlu0 %1629, %v745_v49  }
  0x58   : > { %1554 = vmatpush3.bf16.xpose.msra.mxu0 %v359_v45 }
  0x59   : > { %1568 = vmatprep.subr.msk.bf16.mxu0 %vm342_vm0, %v322_v46  ;;  %684 = vperm.xlu1 %1630, %v446_v16  }
  0x5a   : > { %786 = vperm.xlu0 %1629, %v747_v53  }
  0x5d   : > { %771 = vperm.xlu1 %1630, %v744_v17  }
  0x5e   : > { %796 = vperm.xlu0 %1629, %v749_v58  }
  0x60   : > { %1556 = vmatpush3.bf16.xpose.msra.mxu0 %v362_v54 }
  0x61   : > { %1569 = vmatprep.subr.msk.bf16.mxu0 %vm342_vm0, %v323_v55  ;;  %781 = vperm.xlu1 %1630, %v746_v18  }
  0x62   : > { %986 = vperm.xlu0 %1629, %v751_v62  }
  0x65   : > { %791 = vperm.xlu1 %1630, %v748_v19  }
  0x66   : > { %1072 = vperm.xlu0 %1629, %v1049_v4  }
  0x68   : > { %1558 = vmatpush3.bf16.xpose.msra.mxu0 %v365_v63 }
  0x69   : > { %1570 = vmatprep.subr.msk.bf16.mxu0 %vm342_vm0, %v324_v1  ;;  %801 = vperm.xlu1 %1630, %v750_v20  }
  0x6a   : > { %1082 = vperm.xlu0 %1629, %v1051_v6  }
  0x6d   : > { %991 = vperm.xlu1 %1630, %v752_v21  }
  0x6e   : > { %1092 = vperm.xlu0 %1629, %v1053_v8  }
  0x70   : > { %1560 = vmatpush3.bf16.xpose.msra.mxu0 %v368_v7 }
  0x72   : > { %1102 = vperm.xlu0 %1629, %v1055_v9  }
  0x76   : > { %1292 = vperm.xlu0 %1629, %v1057_v10  }
  0x77   : > { %1562 = vmatmul.mubr.msk.bf16.vlgmr.msra.gmra.mrb[0].mxu0 %vm342_vm0, %v1986_v22  ;;  %v1050_v22 = vld [vmem:[%s2327_s4 + $0xb8] sm:$0xff] }
  0x78   : > { %1174 = vmatprep.mubr.bf16.mxu0 %v1828_v0  ;;  %1077 = vperm.xlu1 %1630, %v1050_v22  }
  0x7c   : > { %1087 = vperm.xlu1 %1630, %v1052_v23  }
  0x80   : > { %1097 = vperm.xlu1 %1630, %v1054_v24  }
  0x84   : > { %1107 = vperm.xlu1 %1630, %v1056_v25  }
  0x88   : > { %1297 = vperm.xlu1 %1630, %v1058_v26  }
  0xb9   : > { %v330_v27 = vpop.permute.xlu0 %329 }
  0xbd   : > { %v335_v30 = vpop.permute.xlu0 %334 }
  0xc1   : > { %v470_v58 = vpop.permute.xlu0 %469 }
  0xc4   : > { %v460_v43 = vpop.permute.xlu1 %459 }
  0xc5   : > { %v480_v9 = vpop.permute.xlu0 %479 }
  0xc8   : > { %v465_v46 = vpop.permute.xlu1 %464 }
  0xcc   : > { %v475_v60 = vpop.permute.xlu1 %474 }
  0xd0   : > { %v485_v11 = vpop.permute.xlu1 %484 }
 0x14a   : > { %v428_v28 = vpop.f32.mrb[0].mxu0 }
 0x14b   : > { %v430_v29 = vpop.f32.mrb[1].mxu0  ;;  %v2125_v36 = vadd.f32 %v428_v28, %v330_v27 }
 0x14c   : > { %v432_v31 = vpop.f32.mrb[2].mxu0  ;;  %v2121_v34 = vadd.f32 %v430_v29, %v330_v27  ;;  %v490_v27 = vpop.permute.xlu0 %489 }
 0x14d   : > { %v2119_v32 = vadd.f32 %v432_v31, %v335_v30  ;;  %v434_v33 = vpop.f32.mrb[3].mxu0  ;;  %v495_v29 = vpop.permute.xlu1 %494 }
 0x14e   : > { %v2123_v35 = vadd.f32 %v434_v33, %v335_v30 }
 0x14f   : > { %v455_v38 = vpack.c.bf16 %v2119_v32, %v2125_v36 }
 0x150   : > { %v456_v37 = vpack.c.bf16 %v2123_v35, %v2121_v34 }
 0x152   : > { %530 = vmatprep.subr.bf16.mxu1 %v456_v37 }
 0x153   : > { %531 = vmatpush1.bf16.msra.mxu1 %v455_v38 }
 0x156   : > { %1471 = vmatmul.mubr.msk.bf16.vlgmr.msra.gmra.mrb[0].mxu1 %vm517_vm1, %v1632_v39 }
 0x157   : > { %572 = vmatprep.mubr.bf16.mxu1 %v1828_v0 }
 0x15e   : > { %1472 = vmatmul.mubr.msk.bf16.gmra.mrb[4].mxu1 %vm517_vm1, %v1633_v40 }
 0x15f   : > { %582 = vmatprep.mubr.bf16.mxu1 %v1828_v0 }
 0x166   : > { %1473 = vmatmul.mubr.msk.bf16.gmra.mrb[8].mxu1 %vm517_vm1, %v1634_v41 }
 0x167   : > { %592 = vmatprep.mubr.bf16.mxu1 %v1828_v0 }
 0x16e   : > { %1474 = vmatmul.mubr.msk.bf16.gmra.mrb[12].mxu1 %vm517_vm1, %v1635_v42 }
 0x16f   : > { %728 = vmatprep.mubr.bf16.mxu1 %v1828_v0 }
 0x229   : > { %v564_v44 = vpop.f32.mrb[0].mxu1 }
 0x22a   : > { %v566_v45 = vpop.f32.mrb[1].mxu1  ;;  %v565_v48 = vadd.f32 %v564_v44, %v460_v43 }
 0x22b   : > { %v568_v47 = vpop.f32.mrb[2].mxu1  ;;  %v567_v51 = vadd.f32 %v566_v45, %v460_v43 }
 0x22c   : > { %v569_v49 = vadd.f32 %v568_v47, %v465_v46  ;;  %v570_v50 = vpop.f32.mrb[3].mxu1 }
 0x22d   : > { %v571_v52 = vadd.f32 %v570_v50, %v465_v46 }
 0x22e   : > { %v2151_v53 = vpack.c.bf16 %v569_v49, %v565_v48 }
 0x22f   : > { %v2153_v54 = vpack.c.bf16 %v571_v52, %v567_v51 }
 0x230   : > { %v1475_v55 = vmul.bf16 3216621497, %v2151_v53 }
 0x231   : > { %v1476_v56 = vmul.bf16 3216621497, %v2153_v54  ;;  %v574_v57 = vpop.f32.mrb[4].mxu1 }
 0x232   : > { %1647 = vpow.bf16 %v1475_v55  ;;  %v576_v59 = vpop.f32.mrb[5].mxu1  ;;  %v575_v62 = vadd.f32 %v574_v57, %v470_v58 }
 0x233   : > { %1649 = vpow.bf16 %v1476_v56  ;;  %v578_v61 = vpop.f32.mrb[6].mxu1  ;;  %v577_v2 = vadd.f32 %v576_v59, %v470_v58 }
 0x234   : > { %v579_v63 = vadd.f32 %v578_v61, %v475_v60  ;;  %v580_v1 = vpop.f32.mrb[7].mxu1 }
 0x235   : > { %v581_v3 = vadd.f32 %v580_v1, %v475_v60 }
 0x236   : > { %v2157_v4 = vpack.c.bf16 %v579_v63, %v575_v62 }
 0x237   : > { %v2159_v5 = vpack.c.bf16 %v581_v3, %v577_v2 }
 0x238   : > { %v1477_v6 = vmul.bf16 3216621497, %v2157_v4 }
 0x239   : > { %v1478_v7 = vmul.bf16 3216621497, %v2159_v5  ;;  %v584_v8 = vpop.f32.mrb[8].mxu1 }
 0x23a   : > { %1651 = vpow.bf16 %v1477_v6  ;;  %v586_v10 = vpop.f32.mrb[9].mxu1  ;;  %v585_v13 = vadd.f32 %v584_v8, %v480_v9 }
 0x23b   : > { %1653 = vpow.bf16 %v1478_v7  ;;  %v588_v12 = vpop.f32.mrb[10].mxu1  ;;  %v587_v17 = vadd.f32 %v586_v10, %v480_v9 }
 0x23c   : > { %v589_v14 = vadd.f32 %v588_v12, %v485_v11  ;;  %v590_v15 = vpop.f32.mrb[11].mxu1 }
 0x23d   : > { %v1648_v16 = vpop.eup %1647  ;;  %v591_v18 = vadd.f32 %v590_v15, %v485_v11 }
 0x23e   : > { %v1650_v19 = vpop.eup %1649  ;;  %v643_v20 = vadd.bf16 1065369472, %v1648_v16  ;;  %v2163_v21 = vpack.c.bf16 %v589_v14, %v585_v13 }
 0x23f   : > { %v644_v22 = vadd.bf16 1065369472, %v1650_v19  ;;  %v608_v23 = vpack.c.bf16 %v591_v18, %v587_v17  ;;  %v680_v19 = vpop.permute.xlu0 %679 }
 0x240   : > { %1655 = vrcp.bf16 %v643_v20  ;;  %v1479_v24 = vmul.bf16 3216621497, %v2163_v21 }
 0x241   : > { %1657 = vrcp.bf16 %v644_v22  ;;  %v1480_v25 = vmul.bf16 3216621497, %v608_v23  ;;  %v594_v26 = vpop.f32.mrb[12].mxu1 }
 0x242   : > { %1659 = vpow.bf16 %v1479_v24  ;;  %v596_v28 = vpop.f32.mrb[13].mxu1  ;;  %v595_v31 = vadd.f32 %v594_v26, %v490_v27 }
 0x243   : > { %1661 = vpow.bf16 %v1480_v25  ;;  %v598_v30 = vpop.f32.mrb[14].mxu1  ;;  %v597_v39 = vadd.f32 %v596_v28, %v490_v27 }
 0x244   : > { %v599_v33 = vadd.f32 %v598_v30, %v495_v29  ;;  %v600_v37 = vpop.f32.mrb[15].mxu1 }
 0x245   : > { %v1652_v38 = vpop.eup %1651  ;;  %v601_v40 = vadd.f32 %v600_v37, %v495_v29 }
 0x246   : > { %v1654_v41 = vpop.eup %1653  ;;  %v645_v42 = vadd.bf16 1065369472, %v1652_v38  ;;  %v609_v43 = vpack.c.bf16 %v599_v33, %v595_v31 }
 0x247   : > { %v646_v44 = vadd.bf16 1065369472, %v1654_v41  ;;  %v610_v45 = vpack.c.bf16 %v601_v40, %v597_v39  ;;  %v767_v39 = vpop.permute.xlu0 %766 }
 0x248   : > { %1663 = vrcp.bf16 %v645_v42  ;;  %v1481_v46 = vmul.bf16 3216621497, %v609_v43 }
 0x249   : > { %1665 = vrcp.bf16 %v646_v44  ;;  %v1482_v47 = vmul.bf16 3216621497, %v610_v45 }
 0x24a   : > { %1667 = vpow.bf16 %v1481_v46 }
 0x24b   : > { %v1656_v48 = vpop.eup %1655  ;;  %1669 = vpow.bf16 %v1482_v47 }
 0x24c   : > { %v1658_v49 = vpop.eup %1657  ;;  %v652_v50 = vmul.bf16 1065369472, %v1656_v48 }
 0x24d   : > { %v1660_v51 = vpop.eup %1659  ;;  %v654_v52 = vmul.bf16 1065369472, %v1658_v49 }
 0x24e   : > { %v1662_v55 = vpop.eup %1661  ;;  %v647_v56 = vadd.bf16 1065369472, %v1660_v51  ;;  %v667_v59 = vmul.bf16 %v652_v50, %v2151_v53 }
 0x24f   : > { %v648_v57 = vadd.bf16 1065369472, %v1662_v55  ;;  %v668_v58 = vmul.bf16 %v654_v52, %v2153_v54  ;;  %v777_v55 = vpop.permute.xlu0 %776 }
 0x250   : > { %1671 = vrcp.bf16 %v647_v56 }
 0x251   : > { %1673 = vrcp.bf16 %v648_v57  ;;  %696 = vmatprep.subr.bf16.mxu1 %v668_v58 }
 0x252   : > { %697 = vmatpush1.bf16.msra.mxu1 %v667_v59 }
 0x253   : > { %v1664_v60 = vpop.eup %1663 }
 0x254   : > { %v1666_v61 = vpop.eup %1665  ;;  %v656_v62 = vmul.bf16 1065369472, %v1664_v60 }
 0x255   : > { %v1668_v63 = vpop.eup %1667  ;;  %v658_v1 = vmul.bf16 1065369472, %v1666_v61 }
 0x256   : > { %v1670_v2 = vpop.eup %1669  ;;  %v649_v3 = vadd.bf16 1065369472, %v1668_v63  ;;  %v669_v8 = vmul.bf16 %v656_v62, %v2157_v4  ;;  %v1636_v4 = vld [vmem:[%s2326_s3] sm:$0xff]  }
 0x257   : > { %v650_v6 = vadd.bf16 1065369472, %v1670_v2  ;;  %v670_v7 = vmul.bf16 %v658_v1, %v2159_v5 }
 0x258   : > { %1675 = vrcp.bf16 %v649_v3 }
 0x259   : > { %1677 = vrcp.bf16 %v650_v6  ;;  %698 = vmatprep.subr.bf16.mxu1 %v670_v7 }
 0x25a   : > { %699 = vmatpush1.bf16.msra.mxu1 %v669_v8  ;;  %v787_v8 = vpop.permute.xlu0 %786 }
 0x25b   : > { %v1672_v53 = vpop.eup %1671 }
 0x25c   : > { %v1674_v54 = vpop.eup %1673  ;;  %v660_v9 = vmul.bf16 1065369472, %v1672_v53 }
 0x25d   : > { %v662_v10 = vmul.bf16 1065369472, %v1674_v54 }
 0x25e   : > { %v671_v12 = vmul.bf16 %v660_v9, %v2163_v21  ;;  %v685_v21 = vpop.permute.xlu1 %684 }
 0x25f   : > { %v672_v11 = vmul.bf16 %v662_v10, %v608_v23 }
 0x261   : > { %700 = vmatprep.subr.bf16.mxu1 %v672_v11 }
 0x262   : > { %701 = vmatpush1.bf16.msra.mxu1 %v671_v12  ;;  %v772_v41 = vpop.permute.xlu1 %771 }
 0x263   : > { %v1676_v13 = vpop.eup %1675 }
 0x264   : > { %v1678_v14 = vpop.eup %1677  ;;  %v664_v15 = vmul.bf16 1065369472, %v1676_v13 }
 0x265   : > { %v666_v16 = vmul.bf16 1065369472, %v1678_v14 }
 0x266   : > { %v673_v17 = vmul.bf16 %v664_v15, %v609_v43  ;;  %v782_v57 = vpop.permute.xlu1 %781 }
 0x267   : > { %v674_v5 = vmul.bf16 %v666_v16, %v610_v45 }
 0x269   : > { %702 = vmatprep.subr.bf16.mxu1 %v674_v5 }
 0x26a   : > { %703 = vmatpush1.bf16.msra.mxu1 %v673_v17  ;;  %v792_v54 = vpop.permute.xlu1 %791 }
 0x26d   : > { %1484 = vmatmul.mubr.msk.bf16.vlgmr.msra.gmra.mrb[16].mxu1 %vm692_vm2, %v1636_v4 }
 0x26e   : > { %868 = vmatprep.mubr.bf16.mxu1 %v1828_v0 }
 0x340   : > { %v730_v18 = vpop.f32.mrb[16].mxu1 }
 0x341   : > { %v732_v20 = vpop.f32.mrb[17].mxu1  ;;  %v731_v24 = vadd.f32 %v730_v18, %v680_v19 }
 0x342   : > { %v733_v22 = vadd.f32 %v732_v20, %v680_v19  ;;  %v734_v23 = vpop.f32.mrb[18].mxu1 }
 0x343   : > { %v735_v25 = vadd.f32 %v734_v23, %v685_v21  ;;  %v736_v26 = vpop.f32.mrb[19].mxu1  ;;  %v2186_v31 = vadd.f32 %v731_v24, %v2125_v36  ;;  %v1640_v36 = vld [vmem:[%s2325_s2 + $0x38] sm:$0xff]   ;;  %v802_v24 = vpop.permute.xlu1 %801 }
 0x344   : > { %v737_v27 = vadd.f32 %v736_v26, %v685_v21  ;;  %v2180_v29 = vadd.f32 %v733_v22, %v2121_v34  ;;  %v1638_v34 = vld [vmem:[%s2325_s2 + $0x28] sm:$0xff]   ;;  %v797_v22 = vpop.permute.xlu0 %796 }
 0x345   : > { %v2177_v28 = vadd.f32 %v735_v25, %v2119_v32  ;;  %v1637_v32 = vld [vmem:[%s2325_s2 + $0x20] sm:$0xff]  }
 0x346   : > { %v2183_v30 = vadd.f32 %v737_v27, %v2123_v35  ;;  %v1639_v35 = vld [vmem:[%s2325_s2 + $0x30] sm:$0xff]  }
 0x347   : > { %v762_v37 = vpack.c.bf16 %v2177_v28, %v2186_v31 }
 0x348   : > { %v763_v33 = vpack.c.bf16 %v2183_v30, %v2180_v29 }
 0x34a   : > { %836 = vmatprep.subr.bf16.mxu1 %v763_v33 }
 0x34b   : > { %837 = vmatpush1.bf16.msra.mxu1 %v762_v37 }
 0x34e   : > { %1497 = vmatmul.mubr.msk.bf16.vlgmr.msra.gmra.mrb[20].mxu1 %vm517_vm1, %v1637_v32 }
 0x34f   : > { %878 = vmatprep.mubr.bf16.mxu1 %v1828_v0 }
 0x356   : > { %1498 = vmatmul.mubr.msk.bf16.gmra.mrb[24].mxu1 %vm517_vm1, %v1638_v34 }
 0x357   : > { %888 = vmatprep.mubr.bf16.mxu1 %v1828_v0 }
 0x35e   : > { %1499 = vmatmul.mubr.msk.bf16.gmra.mrb[28].mxu1 %vm517_vm1, %v1639_v35 }
 0x35f   : > { %898 = vmatprep.mubr.bf16.mxu1 %v1828_v0 }
 0x366   : > { %1500 = vmatmul.mubr.msk.bf16.gmra.mrb[32].mxu1 %vm517_vm1, %v1640_v36 }
 0x367   : > { %1034 = vmatprep.mubr.bf16.mxu1 %v1828_v0 }
 0x421   : > { %v870_v38 = vpop.f32.mrb[20].mxu1 }
 0x422   : > { %v872_v40 = vpop.f32.mrb[21].mxu1  ;;  %v871_v43 = vadd.f32 %v870_v38, %v767_v39 }
 0x423   : > { %v874_v42 = vpop.f32.mrb[22].mxu1  ;;  %v873_v46 = vadd.f32 %v872_v40, %v767_v39 }
 0x424   : > { %v875_v44 = vadd.f32 %v874_v42, %v772_v41  ;;  %v876_v45 = vpop.f32.mrb[23].mxu1 }
 0x425   : > { %v877_v47 = vadd.f32 %v876_v45, %v772_v41 }
 0x426   : > { %v2212_v48 = vpack.c.bf16 %v875_v44, %v871_v43 }
 0x427   : > { %v2214_v49 = vpack.c.bf16 %v877_v47, %v873_v46 }
 0x428   : > { %v1501_v50 = vmul.bf16 3216621497, %v2212_v48 }
 0x429   : > { %v1502_v51 = vmul.bf16 3216621497, %v2214_v49  ;;  %v880_v52 = vpop.f32.mrb[24].mxu1 }
 0x42a   : > { %1679 = vpow.bf16 %v1501_v50  ;;  %v882_v56 = vpop.f32.mrb[25].mxu1  ;;  %v881_v59 = vadd.f32 %v880_v52, %v777_v55 }
 0x42b   : > { %1681 = vpow.bf16 %v1502_v51  ;;  %v884_v58 = vpop.f32.mrb[26].mxu1  ;;  %v883_v62 = vadd.f32 %v882_v56, %v777_v55 }
 0x42c   : > { %v885_v60 = vadd.f32 %v884_v58, %v782_v57  ;;  %v886_v61 = vpop.f32.mrb[27].mxu1 }
 0x42d   : > { %v887_v63 = vadd.f32 %v886_v61, %v782_v57 }
 0x42e   : > { %v2218_v1 = vpack.c.bf16 %v885_v60, %v881_v59 }
 0x42f   : > { %v2220_v2 = vpack.c.bf16 %v887_v63, %v883_v62 }
 0x430   : > { %v1503_v3 = vmul.bf16 3216621497, %v2218_v1 }
 0x431   : > { %v1504_v6 = vmul.bf16 3216621497, %v2220_v2  ;;  %v890_v7 = vpop.f32.mrb[28].mxu1 }
 0x432   : > { %1683 = vpow.bf16 %v1503_v3  ;;  %v892_v53 = vpop.f32.mrb[29].mxu1  ;;  %v891_v10 = vadd.f32 %v890_v7, %v787_v8 }
 0x433   : > { %1685 = vpow.bf16 %v1504_v6  ;;  %v894_v9 = vpop.f32.mrb[30].mxu1  ;;  %v893_v14 = vadd.f32 %v892_v53, %v787_v8 }
 0x434   : > { %v895_v11 = vadd.f32 %v894_v9, %v792_v54  ;;  %v896_v12 = vpop.f32.mrb[31].mxu1 }
 0x435   : > { %v1680_v13 = vpop.eup %1679  ;;  %v897_v15 = vadd.f32 %v896_v12, %v792_v54 }
 0x436   : > { %v1682_v16 = vpop.eup %1681  ;;  %v949_v5 = vadd.bf16 1065369472, %v1680_v13  ;;  %v2224_v17 = vpack.c.bf16 %v895_v11, %v891_v10 }
 0x437   : > { %v950_v4 = vadd.bf16 1065369472, %v1682_v16  ;;  %v914_v18 = vpack.c.bf16 %v897_v15, %v893_v14  ;;  %v987_v16 = vpop.permute.xlu0 %986 }
 0x438   : > { %1687 = vrcp.bf16 %v949_v5  ;;  %v1505_v19 = vmul.bf16 3216621497, %v2224_v17 }
 0x439   : > { %1689 = vrcp.bf16 %v950_v4  ;;  %v1506_v20 = vmul.bf16 3216621497, %v914_v18  ;;  %v900_v21 = vpop.f32.mrb[32].mxu1 }
 0x43a   : > { %1691 = vpow.bf16 %v1505_v19  ;;  %v902_v23 = vpop.f32.mrb[33].mxu1  ;;  %v901_v26 = vadd.f32 %v900_v21, %v797_v22 }
 0x43b   : > { %1693 = vpow.bf16 %v1506_v20  ;;  %v904_v25 = vpop.f32.mrb[34].mxu1  ;;  %v903_v32 = vadd.f32 %v902_v23, %v797_v22 }
 0x43c   : > { %v905_v27 = vadd.f32 %v904_v25, %v802_v24  ;;  %v906_v33 = vpop.f32.mrb[35].mxu1 }
 0x43d   : > { %v1684_v37 = vpop.eup %1683  ;;  %v907_v34 = vadd.f32 %v906_v33, %v802_v24 }
 0x43e   : > { %v1686_v35 = vpop.eup %1685  ;;  %v951_v36 = vadd.bf16 1065369472, %v1684_v37  ;;  %v915_v38 = vpack.c.bf16 %v905_v27, %v901_v26 }
 0x43f   : > { %v952_v39 = vadd.bf16 1065369472, %v1686_v35  ;;  %v916_v40 = vpack.c.bf16 %v907_v34, %v903_v32  ;;  %v1073_v32 = vpop.permute.xlu0 %1072 }
 0x440   : > { %1695 = vrcp.bf16 %v951_v36  ;;  %v1507_v41 = vmul.bf16 3216621497, %v915_v38 }
 0x441   : > { %1697 = vrcp.bf16 %v952_v39  ;;  %v1508_v42 = vmul.bf16 3216621497, %v916_v40 }
 0x442   : > { %1699 = vpow.bf16 %v1507_v41 }
 0x443   : > { %v1688_v43 = vpop.eup %1687  ;;  %1701 = vpow.bf16 %v1508_v42 }
 0x444   : > { %v1690_v44 = vpop.eup %1689  ;;  %v958_v45 = vmul.bf16 1065369472, %v1688_v43 }
 0x445   : > { %v1692_v46 = vpop.eup %1691  ;;  %v960_v47 = vmul.bf16 1065369472, %v1690_v44 }
 0x446   : > { %v1694_v50 = vpop.eup %1693  ;;  %v953_v51 = vadd.bf16 1065369472, %v1692_v46  ;;  %v973_v56 = vmul.bf16 %v958_v45, %v2212_v48 }
 0x447   : > { %v954_v52 = vadd.bf16 1065369472, %v1694_v50  ;;  %v974_v55 = vmul.bf16 %v960_v47, %v2214_v49  ;;  %v1083_v47 = vpop.permute.xlu0 %1082 }
 0x448   : > { %1703 = vrcp.bf16 %v953_v51 }
 0x449   : > { %1705 = vrcp.bf16 %v954_v52  ;;  %1002 = vmatprep.subr.bf16.mxu1 %v974_v55 }
 0x44a   : > { %1003 = vmatpush1.bf16.msra.mxu1 %v973_v56 }
 0x44b   : > { %v1696_v57 = vpop.eup %1695 }
 0x44c   : > { %v1698_v58 = vpop.eup %1697  ;;  %v962_v59 = vmul.bf16 1065369472, %v1696_v57 }
 0x44d   : > { %v1700_v60 = vpop.eup %1699  ;;  %v964_v61 = vmul.bf16 1065369472, %v1698_v58 }
 0x44e   : > { %v1702_v62 = vpop.eup %1701  ;;  %v955_v63 = vadd.bf16 1065369472, %v1700_v60  ;;  %v975_v7 = vmul.bf16 %v962_v59, %v2218_v1  ;;  %v1641_v1 = vld [vmem:[%s2326_s3 + $0x8] sm:$0xff]  }
 0x44f   : > { %v956_v3 = vadd.bf16 1065369472, %v1702_v62  ;;  %v976_v6 = vmul.bf16 %v964_v61, %v2220_v2 }
 0x450   : > { %1707 = vrcp.bf16 %v955_v63 }
 0x451   : > { %1709 = vrcp.bf16 %v956_v3  ;;  %1004 = vmatprep.subr.bf16.mxu1 %v976_v6  ;;  %v1093_v6 = vpop.permute.xlu0 %1092 }
 0x452   : > { %1005 = vmatpush1.bf16.msra.mxu1 %v975_v7 }
 0x453   : > { %v1704_v48 = vpop.eup %1703 }
 0x454   : > { %v1706_v49 = vpop.eup %1705  ;;  %v966_v8 = vmul.bf16 1065369472, %v1704_v48 }
 0x455   : > { %v968_v53 = vmul.bf16 1065369472, %v1706_v49 }
 0x456   : > { %v977_v9 = vmul.bf16 %v966_v8, %v2224_v17  ;;  %v992_v17 = vpop.permute.xlu1 %991 }
 0x457   : > { %v978_v54 = vmul.bf16 %v968_v53, %v914_v18 }
 0x459   : > { %1006 = vmatprep.subr.bf16.mxu1 %v978_v54 }
 0x45a   : > { %1007 = vmatpush1.bf16.msra.mxu1 %v977_v9  ;;  %v1078_v35 = vpop.permute.xlu1 %1077 }
 0x45b   : > { %v1708_v10 = vpop.eup %1707 }
 0x45c   : > { %v1710_v11 = vpop.eup %1709  ;;  %v970_v12 = vmul.bf16 1065369472, %v1708_v10 }
 0x45d   : > { %v972_v13 = vmul.bf16 1065369472, %v1710_v11 }
 0x45e   : > { %v979_v14 = vmul.bf16 %v970_v12, %v915_v38  ;;  %v1088_v51 = vpop.permute.xlu1 %1087 }
 0x45f   : > { %v980_v2 = vmul.bf16 %v972_v13, %v916_v40 }
 0x461   : > { %1008 = vmatprep.subr.bf16.mxu1 %v980_v2 }
 0x462   : > { %1009 = vmatpush1.bf16.msra.mxu1 %v979_v14  ;;  %v1098_v48 = vpop.permute.xlu1 %1097 }
 0x465   : > { %1512 = vmatmul.mubr.msk.bf16.vlgmr.msra.gmra.mrb[36].mxu1 %vm692_vm2, %v1641_v1 }
 0x466   : > { %1340 = vmatprep.mubr.bf16.mxu1 %v1828_v0 }
 0x538   : > { %v1036_v15 = vpop.f32.mrb[36].mxu1 }
 0x539   : > { %v1038_v5 = vpop.f32.mrb[37].mxu1  ;;  %v1037_v19 = vadd.f32 %v1036_v15, %v987_v16 }
 0x53a   : > { %v1039_v4 = vadd.f32 %v1038_v5, %v987_v16  ;;  %v1040_v18 = vpop.f32.mrb[38].mxu1 }
 0x53b   : > { %v1041_v20 = vadd.f32 %v1040_v18, %v992_v17  ;;  %v1042_v21 = vpop.f32.mrb[39].mxu1  ;;  %v2247_v26 = vadd.f32 %v1037_v19, %v2186_v31  ;;  %v1645_v31 = vld [vmem:[%s2325_s2 + $0x58] sm:$0xff]   ;;  %v1108_v18 = vpop.permute.xlu1 %1107 }
 0x53c   : > { %v1043_v22 = vadd.f32 %v1042_v21, %v992_v17  ;;  %v2241_v24 = vadd.f32 %v1039_v4, %v2180_v29  ;;  %v1643_v29 = vld [vmem:[%s2325_s2 + $0x48] sm:$0xff]   ;;  %v1103_v17 = vpop.permute.xlu0 %1102 }
 0x53d   : > { %v2238_v23 = vadd.f32 %v1041_v20, %v2177_v28  ;;  %v1642_v28 = vld [vmem:[%s2325_s2 + $0x40] sm:$0xff]  }
 0x53e   : > { %v2244_v25 = vadd.f32 %v1043_v22, %v2183_v30  ;;  %v1644_v30 = vld [vmem:[%s2325_s2 + $0x50] sm:$0xff]  }
 0x53f   : > { %v1068_v33 = vpack.c.bf16 %v2238_v23, %v2247_v26 }
 0x540   : > { %v1069_v27 = vpack.c.bf16 %v2244_v25, %v2241_v24 }
 0x542   : > { %1142 = vmatprep.subr.bf16.mxu0 %v1069_v27 }
 0x543   : > { %1143 = vmatpush1.bf16.msra.mxu0 %v1068_v33 }
 0x546   : > { %1525 = vmatmul.mubr.msk.bf16.vlgmr.msra.gmra.mrb[4].mxu0 %vm517_vm1, %v1642_v28 }
 0x547   : > { %1184 = vmatprep.mubr.bf16.mxu0 %v1828_v0 }
 0x54e   : > { %1526 = vmatmul.mubr.msk.bf16.gmra.mrb[8].mxu0 %vm517_vm1, %v1643_v29 }
 0x54f   : > { %1194 = vmatprep.mubr.bf16.mxu0 %v1828_v0 }
 0x556   : > { %1527 = vmatmul.mubr.msk.bf16.gmra.mrb[12].mxu0 %vm517_vm1, %v1644_v30 }
 0x557   : > { %1204 = vmatprep.mubr.bf16.mxu0 %v1828_v0 }
 0x55e   : > { %1528 = vmatmul.mubr.msk.bf16.gmra.mrb[16].mxu0 %vm517_vm1, %v1645_v31 }
 0x619   : > { %v1176_v37 = vpop.f32.mrb[4].mxu0 }
 0x61a   : > { %v1178_v34 = vpop.f32.mrb[5].mxu0  ;;  %v1177_v38 = vadd.f32 %v1176_v37, %v1073_v32 }
 0x61b   : > { %v1180_v36 = vpop.f32.mrb[6].mxu0  ;;  %v1179_v41 = vadd.f32 %v1178_v34, %v1073_v32 }
 0x61c   : > { %v1181_v39 = vadd.f32 %v1180_v36, %v1078_v35  ;;  %v1182_v40 = vpop.f32.mrb[7].mxu0 }
 0x61d   : > { %v1183_v42 = vadd.f32 %v1182_v40, %v1078_v35 }
 0x61e   : > { %v2272_v43 = vpack.c.bf16 %v1181_v39, %v1177_v38 }
 0x61f   : > { %v2274_v44 = vpack.c.bf16 %v1183_v42, %v1179_v41 }
 0x620   : > { %v1529_v0 = vmul.bf16 3216621497, %v2272_v43 }
 0x621   : > { %v1530_v45 = vmul.bf16 3216621497, %v2274_v44  ;;  %v1186_v46 = vpop.f32.mrb[8].mxu0 }
 0x622   : > { %1711 = vpow.bf16 %v1529_v0  ;;  %v1188_v50 = vpop.f32.mrb[9].mxu0  ;;  %v1187_v55 = vadd.f32 %v1186_v46, %v1083_v47 }
 0x623   : > { %1713 = vpow.bf16 %v1530_v45  ;;  %v1190_v52 = vpop.f32.mrb[10].mxu0  ;;  %v1189_v58 = vadd.f32 %v1188_v50, %v1083_v47 }
 0x624   : > { %v1191_v56 = vadd.f32 %v1190_v52, %v1088_v51  ;;  %v1192_v57 = vpop.f32.mrb[11].mxu0 }
 0x625   : > { %v1193_v59 = vadd.f32 %v1192_v57, %v1088_v51 }
 0x626   : > { %v2278_v60 = vpack.c.bf16 %v1191_v56, %v1187_v55 }
 0x627   : > { %v2280_v61 = vpack.c.bf16 %v1193_v59, %v1189_v58 }
 0x628   : > { %v1531_v62 = vmul.bf16 3216621497, %v2278_v60 }
 0x629   : > { %v1532_v63 = vmul.bf16 3216621497, %v2280_v61  ;;  %v1196_v3 = vpop.f32.mrb[12].mxu0 }
 0x62a   : > { %1715 = vpow.bf16 %v1531_v62  ;;  %v1198_v7 = vpop.f32.mrb[13].mxu0  ;;  %v1197_v8 = vadd.f32 %v1196_v3, %v1093_v6 }
 0x62b   : > { %1717 = vpow.bf16 %v1532_v63  ;;  %v1200_v49 = vpop.f32.mrb[14].mxu0  ;;  %v1199_v10 = vadd.f32 %v1198_v7, %v1093_v6 }
 0x62c   : > { %v1201_v53 = vadd.f32 %v1200_v49, %v1098_v48  ;;  %v1202_v54 = vpop.f32.mrb[15].mxu0 }
 0x62d   : > { %v1712_v9 = vpop.eup %1711  ;;  %v1203_v11 = vadd.f32 %v1202_v54, %v1098_v48 }
 0x62e   : > { %v1714_v12 = vpop.eup %1713  ;;  %v1255_v13 = vadd.bf16 1065369472, %v1712_v9  ;;  %v2284_v2 = vpack.c.bf16 %v1201_v53, %v1197_v8  ;;  %v1646_v9 = vld [vmem:[%s2326_s3 + $0x10] sm:$0xff]  }
 0x62f   : > { %v1256_v14 = vadd.bf16 1065369472, %v1714_v12  ;;  %v1220_v1 = vpack.c.bf16 %v1203_v11, %v1199_v10  ;;  %v1293_v10 = vpop.permute.xlu0 %1292 }
 0x630   : > { %1719 = vrcp.bf16 %v1255_v13  ;;  %v1533_v15 = vmul.bf16 3216621497, %v2284_v2 }
 0x631   : > { %1721 = vrcp.bf16 %v1256_v14  ;;  %v1534_v16 = vmul.bf16 3216621497, %v1220_v1  ;;  %v1206_v5 = vpop.f32.mrb[16].mxu0 }
 0x632   : > { %1723 = vpow.bf16 %v1533_v15  ;;  %v1208_v4 = vpop.f32.mrb[17].mxu0  ;;  %v1207_v20 = vadd.f32 %v1206_v5, %v1103_v17 }
 0x633   : > { %1725 = vpow.bf16 %v1534_v16  ;;  %v1210_v19 = vpop.f32.mrb[18].mxu0  ;;  %v1209_v33 = vadd.f32 %v1208_v4, %v1103_v17 }
 0x634   : > { %v1211_v21 = vadd.f32 %v1210_v19, %v1108_v18  ;;  %v1212_v22 = vpop.f32.mrb[19].mxu0 }
 0x635   : > { %v1716_v27 = vpop.eup %1715  ;;  %v1213_v28 = vadd.f32 %v1212_v22, %v1108_v18 }
 0x636   : > { %v1718_v29 = vpop.eup %1717  ;;  %v1257_v30 = vadd.bf16 1065369472, %v1716_v27  ;;  %v1221_v31 = vpack.c.bf16 %v1211_v21, %v1207_v20 }
 0x637   : > { %v1258_v37 = vadd.bf16 1065369472, %v1718_v29  ;;  %v1222_v32 = vpack.c.bf16 %v1213_v28, %v1209_v33 }
 0x638   : > { %1727 = vrcp.bf16 %v1257_v30  ;;  %v1535_v34 = vmul.bf16 3216621497, %v1221_v31 }
 0x639   : > { %1729 = vrcp.bf16 %v1258_v37  ;;  %v1536_v35 = vmul.bf16 3216621497, %v1222_v32 }
 0x63a   : > { %1731 = vpow.bf16 %v1535_v34 }
 0x63b   : > { %v1720_v36 = vpop.eup %1719  ;;  %1733 = vpow.bf16 %v1536_v35 }
 0x63c   : > { %v1722_v38 = vpop.eup %1721  ;;  %v1264_v39 = vmul.bf16 1065369472, %v1720_v36 }
 0x63d   : > { %v1724_v40 = vpop.eup %1723  ;;  %v1266_v41 = vmul.bf16 1065369472, %v1722_v38 }
 0x63e   : > { %v1726_v42 = vpop.eup %1725  ;;  %v1259_v0 = vadd.bf16 1065369472, %v1724_v40  ;;  %v1279_v47 = vmul.bf16 %v1264_v39, %v2272_v43 }
 0x63f   : > { %v1260_v45 = vadd.bf16 1065369472, %v1726_v42  ;;  %v1280_v46 = vmul.bf16 %v1266_v41, %v2274_v44 }
 0x640   : > { %1735 = vrcp.bf16 %v1259_v0 }
 0x641   : > { %1737 = vrcp.bf16 %v1260_v45  ;;  %1308 = vmatprep.subr.bf16.mxu1 %v1280_v46 }
 0x642   : > { %1309 = vmatpush1.bf16.msra.mxu1 %v1279_v47 }
 0x643   : > { %v1728_v50 = vpop.eup %1727 }
 0x644   : > { %v1730_v51 = vpop.eup %1729  ;;  %v1268_v52 = vmul.bf16 1065369472, %v1728_v50 }
 0x645   : > { %v1732_v55 = vpop.eup %1731  ;;  %v1270_v56 = vmul.bf16 1065369472, %v1730_v51 }
 0x646   : > { %v1734_v57 = vpop.eup %1733  ;;  %v1261_v58 = vadd.bf16 1065369472, %v1732_v55  ;;  %v1281_v63 = vmul.bf16 %v1268_v52, %v2278_v60 }
 0x647   : > { %v1262_v59 = vadd.bf16 1065369472, %v1734_v57  ;;  %v1282_v62 = vmul.bf16 %v1270_v56, %v2280_v61 }
 0x648   : > { %1739 = vrcp.bf16 %v1261_v58 }
 0x649   : > { %1741 = vrcp.bf16 %v1262_v59  ;;  %1310 = vmatprep.subr.bf16.mxu1 %v1282_v62 }
 0x64a   : > { %1311 = vmatpush1.bf16.msra.mxu1 %v1281_v63 }
 0x64b   : > { %v1736_v43 = vpop.eup %1735 }
 0x64c   : > { %v1738_v44 = vpop.eup %1737  ;;  %v1272_v3 = vmul.bf16 1065369472, %v1736_v43 }
 0x64d   : > { %v1274_v6 = vmul.bf16 1065369472, %v1738_v44 }
 0x64e   : > { %v1283_v48 = vmul.bf16 %v1272_v3, %v2284_v2  ;;  %v1298_v2 = vpop.permute.xlu1 %1297 }
 0x64f   : > { %v1284_v7 = vmul.bf16 %v1274_v6, %v1220_v1 }
 0x651   : > { %1312 = vmatprep.subr.bf16.mxu1 %v1284_v7 }
 0x652   : > { %1313 = vmatpush1.bf16.msra.mxu1 %v1283_v48 }
 0x653   : > { %v1740_v49 = vpop.eup %1739 }
 0x654   : > { %v1742_v8 = vpop.eup %1741  ;;  %v1276_v61 = vmul.bf16 1065369472, %v1740_v49 }
 0x655   : > { %v1278_v53 = vmul.bf16 1065369472, %v1742_v8 }
 0x656   : > { %v1285_v54 = vmul.bf16 %v1276_v61, %v1221_v31 }
 0x657   : > { %v1286_v60 = vmul.bf16 %v1278_v53, %v1222_v32 }
 0x659   : > { %1314 = vmatprep.subr.bf16.mxu1 %v1286_v60 }
 0x65a   : > { %1315 = vmatpush1.bf16.msra.mxu1 %v1285_v54 }
 0x65d   : > { %1540 = vmatmul.mubr.msk.bf16.vlgmr.msra.gmra.mrb[40].mxu1 %vm692_vm2, %v1646_v9 }
 0x730   : > { %v1342_v11 = vpop.f32.mrb[40].mxu1 }
 0x731   : > { %v1343_v12 = vadd.f32 %v1342_v11, %v1293_v10  ;;  %v1344_v13 = vpop.f32.mrb[41].mxu1 }
 0x732   : > { %v1345_v14 = vadd.f32 %v1344_v13, %v1293_v10  ;;  %v1346_v1 = vpop.f32.mrb[42].mxu1 }
 0x733   : > { %v1351_v15 = vadd.f32 %v1343_v12, %v2247_v26  ;;  %v1347_v16 = vadd.f32 %v1346_v1, %v1298_v2  ;;  %v1348_v5 = vpop.f32.mrb[43].mxu1 }
 0x734   : > { %v1352_v17 = vadd.f32 %v1345_v14, %v2241_v24  ;;  %v1349_v4 = vadd.f32 %v1348_v5, %v1298_v2 }
 0x735   : > { %1355 = vst [vmem:[%s271_s7] sm:$0xff] %v1351_v15  ;;  %v1353_v18 = vadd.f32 %v1347_v16, %v2238_v23 }
 0x736   : > { %1356 = vst [vmem:[%s271_s7 + $0x8] sm:$0xff] %v1352_v17  ;;  %v1354_v19 = vadd.f32 %v1349_v4, %v2244_v25 }
 0x737   : > { %1357 = vst [vmem:[%s271_s7 + $0x10] sm:$0xff] %v1353_v18 }
 0x738   : > { %1358 = vst [vmem:[%s271_s7 + $0x18] sm:$0xff] %v1354_v19 }
 0x739 PF: > { %s18_s23 = sadd.s32 1, %s1823_s23   ;;  %s2332_s18 = smov %s1807_s19 }
 0x73a   : > { %p15_p9 = scmp.ge.s32.totalorder %s18_s23, 4   ;;  %s2333_s19 = smov %s1811_s20 }
 0x73b   : > { %s2334_s20 = smov %s1908_s30  ;;  %s2335_s21 = smov %s1819_s22 }
 0x73c   : > { %s2336_s22 = smov %s2338_s25  ;;  %17 = sbr.rel (!%p15_p9) target bundleno = 4 (0x4), region = 84 }
 0x743   :  { %1389 = vsyncpa [#allocation3], 1 }
 0x744   :  { %1391 = vsyncpa [#allocation3 + $0x1], 1 }

</bundles_post_ra>
